<compile_context>
chip_gen: v5e
topology: v5e:2x2
jax: 0.10.0
libtpu: 0.0.40
codegen_flags: <defaults>
</compile_context>

<pallas_src>
import math

import jax
import jax.numpy as jnp
from jax import lax
from jax.experimental import pallas as pl
from jax.experimental.pallas import tpu as pltpu


def _round_up(x, m):
    return ((x + m - 1) // m) * m


# --------------------------------------------------------------------------
# Kernel 1: row-tiled dense linear projection:  out = x @ W + b
# --------------------------------------------------------------------------
def _linear_kernel(x_ref, w_ref, b_ref, o_ref):
    o_ref[...] = (
        jnp.dot(x_ref[...], w_ref[...], preferred_element_type=jnp.float32)
        + b_ref[...]
    )


def linear(x, w, b, *, row_tile=256):
    """x: [R, Din] (R multiple of 8), w: [Din, Dout], b: [1, Dout] -> [R, Dout] f32."""
    r, din = x.shape
    dout = w.shape[1]
    tr = min(row_tile, r)
    x_bf = x.astype(jnp.bfloat16)
    w_bf = w.astype(jnp.bfloat16)
    b_f32 = b.astype(jnp.float32)
    return pl.pallas_call(
        _linear_kernel,
        out_shape=jax.ShapeDtypeStruct((r, dout), jnp.float32),
        grid=(pl.cdiv(r, tr),),
        in_specs=[
            pl.BlockSpec((tr, din), lambda i: (i, 0)),
            pl.BlockSpec((din, dout), lambda i: (0, 0)),
            pl.BlockSpec((1, dout), lambda i: (0, 0)),
        ],
        out_specs=pl.BlockSpec((tr, dout), lambda i: (i, 0)),
        compiler_params=pltpu.CompilerParams(
            dimension_semantics=("parallel",)),
    )(x_bf, w_bf, b_f32)


# --------------------------------------------------------------------------
# Kernel 2: fused-head sparse (edge-list) attention, tiled over edges.
#   inputs : src/dst (TM,1) int32, Q/K/V (Npad, H*D) bf16 (resident),
#            E (TM, H*D) f32 (streamed)
#   output : wV/(Z+eps) as (Npad, H*D) f32, accumulated across the edge grid
# --------------------------------------------------------------------------
def _edge_attn_kernel(src_ref, dst_ref, q_ref, k_ref, v_ref, e_ref,
                      o_ref, z_ref):
    tm = src_ref.shape[0]
    n_pad, hd = q_ref.shape
    num_heads = z_ref.shape[1]
    d_head = hd // num_heads

    @pl.when(pl.program_id(0) == 0)
    def _init():
        o_ref[...] = jnp.zeros_like(o_ref)
        z_ref[...] = jnp.zeros_like(z_ref)

    src = src_ref[...]                                       # (TM, 1) int32
    dst = dst_ref[...]                                       # (TM, 1) int32

    # One-hot gather/scatter blocks (0/1 exact in bf16 -> MXU-friendly).
    node_iota = lax.broadcasted_iota(jnp.int32, (tm, n_pad), 1)
    oh_src = (node_iota == src).astype(jnp.bfloat16)         # (TM, Npad)
    oh_dst = (node_iota == dst).astype(jnp.bfloat16)         # (TM, Npad)

    # Row gathers K[src], Q[dst], V[src] on the MXU, f32 accumulation.
    k_src = jnp.dot(oh_src, k_ref[...], preferred_element_type=jnp.float32)
    q_dst = jnp.dot(oh_dst, q_ref[...], preferred_element_type=jnp.float32)
    v_src = jnp.dot(oh_src, v_ref[...], preferred_element_type=jnp.float32)

    # Per-head segment-sum / broadcast selector matrices over the fused H*D axis.
    sel = (lax.broadcasted_iota(jnp.int32, (hd, num_heads), 0) // d_head ==
           lax.broadcasted_iota(jnp.int32, (hd, num_heads), 1)
           ).astype(jnp.float32)                             # (HD, H)
    sel_t = (lax.broadcasted_iota(jnp.int32, (num_heads, hd), 1) // d_head ==
             lax.broadcasted_iota(jnp.int32, (num_heads, hd), 0)
             ).astype(jnp.float32)                           # (H, HD)

    # score = exp(clamp(sum_d K*Q*E, -5, 5))  (1/sqrt(d_head) folded into Q).
    score_elem = k_src * q_dst * e_ref[...]                  # (TM, HD) f32
    s = jnp.dot(score_elem, sel, preferred_element_type=jnp.float32)   # (TM, H)
    score = jnp.exp(jnp.clip(s, -5.0, 5.0))                  # (TM, H)

    score_hd = jnp.dot(score, sel_t, preferred_element_type=jnp.float32)
    msg = (v_src * score_hd).astype(jnp.bfloat16)            # (TM, HD)

    # Scatter-add over destination nodes: contract the edge axis directly.
    dnums = (((0,), (0,)), ((), ()))
    o_ref[...] += lax.dot_general(oh_dst, msg, dnums,
                                  preferred_element_type=jnp.float32)
    z_ref[...] += lax.dot_general(oh_dst, score.astype(jnp.bfloat16), dnums,
                                  preferred_element_type=jnp.float32)

    @pl.when(pl.program_id(0) == pl.num_programs(0) - 1)
    def _finalize():
        z_hd = jnp.dot(z_ref[...], sel_t,
                       preferred_element_type=jnp.float32)   # (Npad, HD)
        o_ref[...] = o_ref[...] * pl.reciprocal(z_hd + 1e-6, approx=True)


# --------------------------------------------------------------------------
# Wrapper: ExphormerAttention forward
# --------------------------------------------------------------------------
def exphormer_attention(h, edge_attr, src, dst, params, num_heads,
                        *, edge_tile=None):
    n = h.shape[0]
    m = src.shape[0]
    hd = params["Wq"].shape[1]                 # H * D
    d_head = hd // num_heads
    inv_sqrt_d = 1.0 / math.sqrt(d_head)

    n_pad = _round_up(n, 8)

    # Edge tile: keep the two (TM, Npad) bf16 one-hot blocks under ~8 MiB.
    if edge_tile is None:
        budget = 8 * 1024 * 1024
        tm = max(8, min(512, (budget // (4 * n_pad)) // 8 * 8,
                        _round_up(m, 8)))
    else:
        tm = edge_tile
    m_pad = _round_up(m, tm)

    # Pad rows once up front. Padded edges point at node index `n`, which is
    # either a padded node row (sliced off below) or outside the one-hot iota
    # range, so they never touch real nodes.
    h_p = jnp.pad(h, ((0, n_pad - n), (0, 0)))
    e_attr_p = jnp.pad(edge_attr, ((0, m_pad - m), (0, 0)))
    src_p = jnp.pad(src.astype(jnp.int32), (0, m_pad - m),
                    constant_values=n).reshape(m_pad, 1)
    dst_p = jnp.pad(dst.astype(jnp.int32), (0, m_pad - m),
                    constant_values=n).reshape(m_pad, 1)

    # Fused Q/K/V projection: h read from HBM once; 1/sqrt(d) folded into Q.
    w_qkv = jnp.concatenate(
        [params["Wq"] * inv_sqrt_d, params["Wk"], params["Wv"]], axis=1)
    b_qkv = jnp.concatenate(
        [params["bq"] * inv_sqrt_d, params["bk"], params["bv"]], axis=1)
    qkv = linear(h_p, w_qkv, b_qkv)                        # (Npad, 3*HD) f32
    e = linear(e_attr_p, params["We"], params["be"])       # (Mpad, HD) f32

    q = qkv[:, :hd].astype(jnp.bfloat16)
    k = qkv[:, hd:2 * hd].astype(jnp.bfloat16)
    v = qkv[:, 2 * hd:].astype(jnp.bfloat16)

    out = pl.pallas_call(
        _edge_attn_kernel,
        out_shape=jax.ShapeDtypeStruct((n_pad, hd), jnp.float32),
        grid=(m_pad // tm,),
        in_specs=[
            pl.BlockSpec((tm, 1), lambda i: (i, 0)),        # src
            pl.BlockSpec((tm, 1), lambda i: (i, 0)),        # dst
            pl.BlockSpec((n_pad, hd), lambda i: (0, 0)),    # Q (resident)
            pl.BlockSpec((n_pad, hd), lambda i: (0, 0)),    # K (resident)
            pl.BlockSpec((n_pad, hd), lambda i: (0, 0)),    # V (resident)
            pl.BlockSpec((tm, hd), lambda i: (i, 0)),       # E (streamed)
        ],
        out_specs=pl.BlockSpec((n_pad, hd), lambda i: (0, 0)),
        scratch_shapes=[pltpu.VMEM((n_pad, num_heads), jnp.float32)],
        compiler_params=pltpu.CompilerParams(
            dimension_semantics=("arbitrary",),
            vmem_limit_bytes=48 * 1024 * 1024),
    )(src_p, dst_p, q, k, v, e)

    # [Npad, H*D] -> [N, H*D]  (matches torch .view(-1, num_heads*out_dim))
    return out[:n]


# --------------------------------------------------------------------------
# Pure-JAX f32 reference (mirrors the torch forward exactly) for verification.
# --------------------------------------------------------------------------
def reference(h, edge_attr, src, dst, params, num_heads):
    n = h.shape[0]
    m = src.shape[0]
    d_total = params["Wq"].shape[1]
    d = d_total // num_heads
    Q = (h @ params["Wq"] + params["bq"]).reshape(n, num_heads, d)
    K = (h @ params["Wk"] + params["bk"]).reshape(n, num_heads, d)
    V = (h @ params["Wv"] + params["bv"]).reshape(n, num_heads, d)
    E = (edge_attr @ params["We"] + params["be"]).reshape(m, num_heads, d)

    score = K[src] * Q[dst] / jnp.sqrt(jnp.float32(d)) * E
    score = jnp.exp(jnp.clip(score.sum(-1, keepdims=True), -5.0, 5.0))
    msg = V[src] * score
    wV = jnp.zeros((n, num_heads, d), jnp.float32).at[dst].add(msg)
    Z = jnp.zeros((n, num_heads, 1), jnp.float32).at[dst].add(score)
    return (wV / (Z + 1e-6)).reshape(n, num_heads * d)


if __name__ == "__main__":
    in_dim, out_dim, num_heads = 32, 32, 4
    dim_edge = in_dim
    n_nodes, n_edges = 20, 48        # exercises node padding (20->24) and 3 edge tiles

    key = jax.random.PRNGKey(0)
    keys = jax.random.split(key, 12)
    s = 0.1
    params = {
        "Wq": s * jax.random.normal(keys[0], (in_dim, out_dim), jnp.float32),
        "bq": s * jax.random.normal(keys[1], (1, out_dim), jnp.float32),
        "Wk": s * jax.random.normal(keys[2], (in_dim, out_dim), jnp.float32),
        "bk": s * jax.random.normal(keys[3], (1, out_dim), jnp.float32),
        "Wv": s * jax.random.normal(keys[4], (in_dim, out_dim), jnp.float32),
        "bv": s * jax.random.normal(keys[5], (1, out_dim), jnp.float32),
        "We": s * jax.random.normal(keys[6], (dim_edge, out_dim), jnp.float32),
        "be": s * jax.random.normal(keys[7], (1, out_dim), jnp.float32),
    }

    h = jax.random.normal(keys[8], (n_nodes, in_dim), jnp.float32)
    edge_attr = jax.random.normal(keys[9], (n_edges, dim_edge), jnp.float32)
    src = jax.random.randint(keys[10], (n_edges,), 0, n_nodes, jnp.int32)
    dst = jax.random.randint(keys[11], (n_edges,), 0, n_nodes, jnp.int32)

    out = exphormer_attention(h, edge_attr, src, dst, params, num_heads,
                              edge_tile=16)    # force multiple edge blocks
    out = jax.block_until_ready(out)

    ref = reference(h, edge_attr, src, dst, params, num_heads)
    assert out.shape == (n_nodes, out_dim), out.shape
    max_err = float(jnp.max(jnp.abs(out - ref)))
    # bf16 matmul operands + approx reciprocal -> loosened tolerance vs f32 ref.
    assert jnp.allclose(out, ref, atol=3e-2, rtol=3e-2), (
        "max abs err: %f" % max_err)

    print("KERNEL_OK")
</pallas_src>

<mosaic_0001>
module attributes {stable_mosaic.version = 11 : i64} {
  func.func @_linear_kernel(%arg0: i32, %arg1: memref<24x32xbf16, #tpu.memory_space<vmem>>, %arg2: memref<32x96xbf16, #tpu.memory_space<vmem>>, %arg3: memref<1x96xf32, #tpu.memory_space<vmem>>, %arg4: memref<24x96xf32, #tpu.memory_space<vmem>>) attributes {dimension_semantics = [#tpu.dimension_semantics<parallel>], iteration_bounds = array<i64: 1>, scalar_prefetch = 0 : i64, scratch_operands = 0 : i64, tpu.core_type = #tpu.core_type<tc>, window_params = [{transform_indices = @transform_0, window_bounds = array<i64: 24, 32>}, {pipeline_mode = #tpu.pipeline_mode<synchronous>, transform_indices = @transform_1, window_bounds = array<i64: 32, 96>}, {pipeline_mode = #tpu.pipeline_mode<synchronous>, transform_indices = @transform_2, window_bounds = array<i64: 1, 96>}, {transform_indices = @transform_3, window_bounds = array<i64: 24, 96>}]} {
    %c0 = arith.constant 0 : index
    %c0_0 = arith.constant 0 : index
    %0 = vector.load %arg1[%c0, %c0_0] : memref<24x32xbf16, #tpu.memory_space<vmem>>, vector<24x32xbf16>
    %c0_1 = arith.constant 0 : index
    %c0_2 = arith.constant 0 : index
    %1 = vector.load %arg2[%c0_1, %c0_2] : memref<32x96xbf16, #tpu.memory_space<vmem>>, vector<32x96xbf16>
    %cst = arith.constant dense<0.000000e+00> : vector<24x96xf32>
    %2 = tpu.matmul %0, %1, %cst {dimension_numbers = #tpu.dot_dimension_numbers<[1], [0], [0], [1], [0, 0, 1, 1], [], []>} : vector<24x32xbf16>, vector<32x96xbf16>, vector<24x96xf32> -> vector<24x96xf32>
    %c0_3 = arith.constant 0 : index
    %c0_4 = arith.constant 0 : index
    %3 = vector.load %arg3[%c0_3, %c0_4] : memref<1x96xf32, #tpu.memory_space<vmem>>, vector<1x96xf32>
    %4 = vector.broadcast %3 : vector<1x96xf32> to vector<24x96xf32>
    %5 = arith.addf %2, %4 : vector<24x96xf32>
    %c0_5 = arith.constant 0 : index
    %c0_6 = arith.constant 0 : index
    %6 = vector.load %arg4[%c0_5, %c0_6] : memref<24x96xf32, #tpu.memory_space<vmem>>, vector<24x96xf32>
    tpu.vector_store %arg4[%c0_5, %c0_6], %5 {strides = array<i32>} : memref<24x96xf32, #tpu.memory_space<vmem>>, vector<24x96xf32>,
    return
  }
  func.func @transform_0(%arg0: i32) -> (i32, i32) {
    %c0_i32 = arith.constant 0 : i32
    %c0_i32_0 = arith.constant 0 : i32
    return %arg0, %c0_i32 : i32, i32
  }
  func.func @transform_1(%arg0: i32) -> (i32, i32) {
    %c0_i32 = arith.constant 0 : i32
    %c0_i32_0 = arith.constant 0 : i32
    %c0_i32_1 = arith.constant 0 : i32
    return %c0_i32, %c0_i32_0 : i32, i32
  }
  func.func @transform_2(%arg0: i32) -> (i32, i32) {
    %c0_i32 = arith.constant 0 : i32
    %c0_i32_0 = arith.constant 0 : i32
    %c0_i32_1 = arith.constant 0 : i32
    return %c0_i32, %c0_i32_0 : i32, i32
  }
  func.func @transform_3(%arg0: i32) -> (i32, i32) {
    %c0_i32 = arith.constant 0 : i32
    %c0_i32_0 = arith.constant 0 : i32
    return %arg0, %c0_i32 : i32, i32
  }
}

</mosaic_0001>

<bundles_post_ra>
// kernel: tpu_custom_call.1
= control target key start
LH: loop header
LB: loop body
LE: loop exit
PB: predicated region body
PF: predicated region fallthrough
CT: control target
= control target key end

     0   :  { %8 = vsyncpa [#allocation3], 0  ;;  %s272_s0 = inlined_call_operand.hbm [shape: bf16[24,32], index: 0, kind: input, shape index: {}]   ;;  %s273_s1 = inlined_call_operand.hbm [shape: bf16[32,96], index: 1, kind: input, shape index: {}]   ;;  %s274_s2 = inlined_call_operand.vmem [shape: f32[1,96], index: 2, kind: input, shape index: {}]   ;;  %s275_s3 = inlined_call_operand.hbm [shape: f32[24,96], index: 3, kind: output, shape index: {}]  }
   0x1   :  { %9 = vsyncpa [#allocation6], 0 }
   0x2   :  { %10 = vsyncpa [#allocation4], 0  ;;  %s15_s14 = sshll.u32 %s272_s0, 4  ;;  %s233_s15 = smov [#allocation2]   ;;  %s16_s14 = int_to_ptr.hbm [resolvable:$true] %s15_s14 }
   0x3   :  { %s17_s16 = sshll.u32 %s233_s15, 4  ;;  %s28_s19 = sshll.u32 %s273_s1, 4  ;;  %s18_s16 = int_to_ptr.vmem [resolvable:$true] %s17_s16  ;;  %s29_s19 = int_to_ptr.hbm [resolvable:$true] %s28_s19 }
   0x4   :  { %s234_s20 = smov 64   ;;  %s235_s21 = smov 4  }
   0x5   :  { %23 = dma.hbm_to_vmem [thread:$0]  %s16_s14, 192, %s18_s16, [#allocation3], %s234_s20, %s234_s20, %s235_s21  }
   0x6   :  { %s236_s22 = smov [#allocation5]  }
   0x7   :  { %s30_s23 = sshll.u32 %s236_s22, 4  ;;  %s31_s23 = int_to_ptr.vmem [resolvable:$true] %s30_s23 }
   0x8   :  { %36 = dma.hbm_to_vmem [thread:$0]  %s29_s19, 256, %s31_s23, [#allocation6], %s234_s20, %s234_s20, %s235_s21  }
   0x9   :  { %227 = dma.done.wait [#allocation3], 192  }
   0xa   :  { %228 = vsyncadd [#allocation3], 4294967104 }
   0xb   :  { %229 = dma.done.wait [#allocation6], 256  }
   0xc   :  { %230 = vsyncadd [#allocation6], 4294967040  ;;  %v144_v0 = vld [vmem:[#allocation5 + $0x8] sm:$0xff]  ;;  %v50_v1 = vld [vmem:[#allocation2 + $0x8] sm:$0xf]  ;;  %vm79_vm0 = vcmask 261120  }
   0xd   :  { %92 = vmatpush.bf16.msra.mxu0 %v144_v0  ;;  %145 = vmatpush.bf16.msra.mxu1 %v144_v0  ;;  %v143_v2 = vld [vmem:[#allocation5] sm:$0xff]  ;;  %v64_v3 = vunpack.c.l.b16 %v50_v1  ;;  %v142_v4 = vld [vmem:[#allocation2] sm:$0xff]  ;;  %vm104_vm1 = vcmask 785408   ;;  %s237_s24 = smov [#allocation7]   ;;  %s114_s28 = sshll.u32 %s275_s3, 4  ;;  %s115_s28 = int_to_ptr.hbm [resolvable:$true] %s114_s28 }
   0xe   :  { %v154_v6 = vld [vmem:[%s274_s2] ss:$0 sm:$0xff]  ;;  %s112_s25 = sshll.u32 %s237_s24, 4  ;;  %s238_s2 = smov 128   ;;  %s113_s25 = int_to_ptr.vmem [resolvable:$true] %s112_s25 }
   0xf   :  { %v66_v5 = vpack.c.b16 %v64_v3, %v64_v3  ;;  %s239_s29 = smov 8  }
  0x11   :  { %93 = vmatpush.bf16.msra.mxu0 %v143_v2  ;;  %146 = vmatpush.bf16.msra.mxu1 %v143_v2 }
  0x14   :  { %140 = vmatmul.msk.bf16.vlgmr.msra.gmra.mxu0 %vm79_vm0, %v142_v4  ;;  %141 = vmatmul.msk.bf16.vlgmr.msra.gmra.mxu1 %vm79_vm0, %v66_v5 }
  0x91   :  { %v95_v7 = vpop.f32.mrf.mxu0  ;;  %v100_v8 = vpop.f32.mrf.mxu1 }
  0x92   :  { %v96_v9 = vadd.f32 %v154_v6, %v95_v7  ;;  %v101_v10 = vadd.f32 %v154_v6, %v100_v8 }
  0x94   :  { %105 = vst.msk [vmem:[#allocation7] sm:$0xff] %vm104_vm1, %v96_v9 }
  0x95   :  { %107 = vst.msk [vmem:[#allocation7 + $0x10] sm:$0xff] %vm104_vm1, %v101_v10 }
  0x99   :  { %v97_v11 = vpop.f32.mrf.mxu0  ;;  %v102_v12 = vpop.f32.mrf.mxu1 }
  0x9a   :  { %v98_v13 = vadd.f32 %v154_v6, %v97_v11 }
  0x9c   :  { %106 = vst.msk [vmem:[#allocation7 + $0x8] sm:$0xff] %vm104_vm1, %v98_v13 }
  0x9d   :  { %120 = dma.vmem_to_hbm [thread:$0]  %s113_s25, 384, %s115_s28, [#allocation4], %s238_s2, %s238_s2, %s239_s29  }
  0x9e   :  { %231 = dma.done.wait [#allocation4], 384  }
  0x9f   :  { %232 = vsyncadd [#allocation4], 4294966912 }
  0xa0   :  { %125 = vsyncpa [#allocation3], 1 }
  0xa1   :  { %126 = vsyncpa [#allocation6], 1 }
  0xa2   :  { %127 = vsyncpa [#allocation4], 1 }

</bundles_post_ra>
